<compile_context>
chip_gen: v7x
topology: tpu7x:2x2x1
jax: 0.10.0
libtpu: 0.0.40
codegen_flags: <defaults>
</compile_context>

<pallas_src>
import functools

import jax
import jax.numpy as jnp
from jax.experimental import pallas as pl
from jax.experimental.pallas import tpu as pltpu

INPUT_DIM = 4          # ['YearToMaturity', 'StockPrice', 'StrikePrice', 'ImpliedVolatility']
HIDDEN_DIM = 128
NUM_LAYERS = 3         # Lin(4,H)+ReLU, (num_layers-1) x [Lin(H,H)+ReLU], Lin(H,1)
NUM_HIDDEN = NUM_LAYERS - 1
FUSED_DIM = 2 * HIDDEN_DIM   # drift net occupies cols [:H], diffusion net cols [H:]
OUT_DIM = 2                  # col 0 = drift, col 1 = diffusion (pre-softplus)


def _round_up(x, m):
    return ((x + m - 1) // m) * m


# --------------------------------------------------------------------------- #
# Kernel
# --------------------------------------------------------------------------- #
def _neural_sde_kernel(x_ref, w_in_ref, w_hid_ref, w_out_ref, b_ref, out_ref):
    # x tile: (TILE_B, 4) f32 -> bf16 for the MXU.
    x = x_ref[...].astype(jnp.bfloat16)
    b = b_ref[...]                                     # (NUM_LAYERS + 1, 256) f32

    # Layer 0: (TILE_B, 4) @ (4, 256) -> (TILE_B, 256), f32 accumulate.
    h = jnp.dot(x, w_in_ref[...], preferred_element_type=jnp.float32)
    h = jnp.maximum(h + b[0:1, :], 0.0)

    # Hidden layers: block-diagonal (256, 256) -> both nets in one MXU pass.
    for l in range(NUM_HIDDEN):
        h = jnp.dot(h.astype(jnp.bfloat16), w_hid_ref[l],
                    preferred_element_type=jnp.float32)
        h = jnp.maximum(h + b[l + 1:l + 2, :], 0.0)

    # Merged heads: (TILE_B, 256) @ (256, 2) -> (TILE_B, 2).
    y = jnp.dot(h.astype(jnp.bfloat16), w_out_ref[...],
                preferred_element_type=jnp.float32)
    y = y + b[NUM_LAYERS:NUM_LAYERS + 1, 0:OUT_DIM]

    # Softplus (stable): max(z, 0) + log1p(exp(-|z|)); apply only to the
    # diffusion column via a lane mask (no concat/slice relayout).
    sp = jnp.maximum(y, 0.0) + jnp.log1p(jnp.exp(-jnp.abs(y)))
    col = jax.lax.broadcasted_iota(jnp.int32, y.shape, dimension=1)
    out_ref[...] = jnp.where(col == 0, y, sp).astype(out_ref.dtype)


# --------------------------------------------------------------------------- #
# Parameter packing (fuse drift + diffusion nets side by side, bf16 weights)
# --------------------------------------------------------------------------- #
def _pack_params(drift_params, diffusion_params):
    H = HIDDEN_DIM

    dws = [w for (w, _) in drift_params]
    dbs = [jnp.asarray(bb, jnp.float32) for (_, bb) in drift_params]
    gws = [w for (w, _) in diffusion_params]
    gbs = [jnp.asarray(bb, jnp.float32) for (_, bb) in diffusion_params]

    # Layer 0: (4, H) | (4, H) -> (4, 2H)
    w_in = jnp.concatenate([dws[0], gws[0]], axis=1)

    # Hidden layers: block-diagonal (2H, 2H) per layer, stacked.
    blocks = []
    for l in range(1, 1 + NUM_HIDDEN):
        blk = jnp.zeros((FUSED_DIM, FUSED_DIM), jnp.float32)
        blk = blk.at[:H, :H].set(dws[l]).at[H:, H:].set(gws[l])
        blocks.append(blk)
    w_hid = jnp.stack(blocks, axis=0)                  # (NUM_HIDDEN, 2H, 2H)

    # Heads: drift head -> col 0 (rows :H), diffusion head -> col 1 (rows H:).
    w_out = jnp.zeros((FUSED_DIM, OUT_DIM), jnp.float32)
    w_out = w_out.at[:H, 0:1].set(dws[-1]).at[H:, 1:2].set(gws[-1])

    # Bias slab: one (NUM_LAYERS + 1, 2H) f32 array (head biases in row -1).
    b_all = jnp.zeros((NUM_LAYERS + 1, FUSED_DIM), jnp.float32)
    b_all = b_all.at[0, :H].set(dbs[0]).at[0, H:].set(gbs[0])
    for l in range(1, 1 + NUM_HIDDEN):
        b_all = b_all.at[l, :H].set(dbs[l]).at[l, H:].set(gbs[l])
    b_all = b_all.at[NUM_LAYERS, 0].set(dbs[-1][0])
    b_all = b_all.at[NUM_LAYERS, 1].set(gbs[-1][0])

    return (w_in.astype(jnp.bfloat16),
            w_hid.astype(jnp.bfloat16),
            w_out.astype(jnp.bfloat16),
            b_all)


# --------------------------------------------------------------------------- #
# Wrapper
# --------------------------------------------------------------------------- #
@functools.partial(jax.jit, static_argnames=("tile_b",))
def neural_sde_forward(x, drift_params, diffusion_params, *, tile_b=1024):
    """x: (B, INPUT_DIM) f32 -> (drift (B, 1), diffusion (B, 1)), both f32."""
    B = x.shape[0]
    tile_b = max(8, _round_up(int(tile_b), 8))
    tile_b = min(tile_b, _round_up(B, 8))
    Bp = _round_up(B, tile_b)
    if Bp != B:
        x = jnp.pad(x, ((0, Bp - B), (0, 0)))

    w_in, w_hid, w_out, b_all = _pack_params(drift_params, diffusion_params)

    grid = (Bp // tile_b,)
    out = pl.pallas_call(
        _neural_sde_kernel,
        out_shape=jax.ShapeDtypeStruct((Bp, OUT_DIM), jnp.float32),
        grid=grid,
        in_specs=[
            pl.BlockSpec((tile_b, INPUT_DIM), lambda i: (i, 0)),          # x tile
            pl.BlockSpec((INPUT_DIM, FUSED_DIM), lambda i: (0, 0)),       # w_in
            pl.BlockSpec((NUM_HIDDEN, FUSED_DIM, FUSED_DIM),
                         lambda i: (0, 0, 0)),                            # w_hidden
            pl.BlockSpec((FUSED_DIM, OUT_DIM), lambda i: (0, 0)),         # w_out
            pl.BlockSpec((NUM_LAYERS + 1, FUSED_DIM), lambda i: (0, 0)),  # biases
        ],
        out_specs=pl.BlockSpec((tile_b, OUT_DIM), lambda i: (i, 0)),
        compiler_params=pltpu.CompilerParams(
            dimension_semantics=("parallel",),        # 2 TCs on v7x; no-op elsewhere
            vmem_limit_bytes=32 * 1024 * 1024,        # v5e default is only 16 MiB
        ),
    )(x, w_in, w_hid, w_out, b_all)

    drift = out[:B, 0:1]
    diffusion = out[:B, 1:2]
    return drift, diffusion


# --------------------------------------------------------------------------- #
# Init + pure-JAX reference (mirrors the PyTorch forward)
# --------------------------------------------------------------------------- #
def init_mlp_params(key, input_dim, hidden_dim, num_layers):
    """PyTorch-like layer shapes, weights stored as (in_dim, out_dim)."""
    dims = [input_dim] + [hidden_dim] * num_layers + [1]
    params = []
    for i in range(len(dims) - 1):
        key, kw, kb = jax.random.split(key, 3)
        bound = 1.0 / jnp.sqrt(dims[i])
        w = jax.random.uniform(kw, (dims[i], dims[i + 1]),
                               minval=-bound, maxval=bound, dtype=jnp.float32)
        b = jax.random.uniform(kb, (dims[i + 1],),
                               minval=-bound, maxval=bound, dtype=jnp.float32)
        params.append((w, b))
    return params


def reference_forward(x, drift_params, diffusion_params):
    def mlp(h, params):
        for (w, b) in params[:-1]:
            h = jnp.maximum(h @ w + b, 0.0)
        w, b = params[-1]
        return h @ w + b
    drift = mlp(x, drift_params)
    diffusion = jax.nn.softplus(mlp(x, diffusion_params))
    return drift, diffusion


# --------------------------------------------------------------------------- #
if __name__ == "__main__":
    key = jax.random.PRNGKey(0)
    kdata, kd, kg = jax.random.split(key, 3)

    drift_params = init_mlp_params(kd, INPUT_DIM, HIDDEN_DIM, NUM_LAYERS)
    diffusion_params = init_mlp_params(kg, INPUT_DIM, HIDDEN_DIM, NUM_LAYERS)

    # (batch, tile_b): small single-tile case + multi-tile case with batch padding.
    for batch, tile_b in ((8, 1024), (200, 64)):
        kdata, kx = jax.random.split(kdata)
        x = jax.random.normal(kx, (batch, INPUT_DIM), dtype=jnp.float32)

        drift, diffusion = neural_sde_forward(x, drift_params, diffusion_params,
                                              tile_b=tile_b)
        jax.block_until_ready((drift, diffusion))

        ref_drift, ref_diffusion = reference_forward(x, drift_params, diffusion_params)
        assert drift.shape == (batch, 1) and diffusion.shape == (batch, 1)
        # Loosened tolerance: kernel matmuls run in bf16 (f32 accumulation).
        assert jnp.allclose(drift, ref_drift, atol=5e-2, rtol=5e-2)
        assert jnp.allclose(diffusion, ref_diffusion, atol=5e-2, rtol=5e-2)
        assert bool(jnp.all(diffusion > 0.0))   # softplus output strictly positive

    print("KERNEL_OK")
</pallas_src>

<mosaic_0001>
module attributes {stable_mosaic.version = 11 : i64} {
  func.func @_neural_sde_kernel(%arg0: i32, %arg1: memref<8x4xf32, #tpu.memory_space<vmem>>, %arg2: memref<4x256xbf16, #tpu.memory_space<vmem>>, %arg3: memref<2x256x256xbf16, #tpu.memory_space<vmem>>, %arg4: memref<256x2xbf16, #tpu.memory_space<vmem>>, %arg5: memref<4x256xf32, #tpu.memory_space<vmem>>, %arg6: memref<8x2xf32, #tpu.memory_space<vmem>>) attributes {dimension_semantics = [#tpu.dimension_semantics<parallel>], iteration_bounds = array<i64: 1>, scalar_prefetch = 0 : i64, scratch_operands = 0 : i64, tpu.core_type = #tpu.core_type<tc>, window_params = [{transform_indices = @transform_0, window_bounds = array<i64: 8, 4>}, {pipeline_mode = #tpu.pipeline_mode<synchronous>, transform_indices = @transform_1, window_bounds = array<i64: 4, 256>}, {pipeline_mode = #tpu.pipeline_mode<synchronous>, transform_indices = @transform_2, window_bounds = array<i64: 2, 256, 256>}, {pipeline_mode = #tpu.pipeline_mode<synchronous>, transform_indices = @transform_3, window_bounds = array<i64: 256, 2>}, {pipeline_mode = #tpu.pipeline_mode<synchronous>, transform_indices = @transform_4, window_bounds = array<i64: 4, 256>}, {transform_indices = @transform_5, window_bounds = array<i64: 8, 2>}]} {
    %c0 = arith.constant 0 : index
    %c0_0 = arith.constant 0 : index
    %0 = vector.load %arg1[%c0, %c0_0] : memref<8x4xf32, #tpu.memory_space<vmem>>, vector<8x4xf32>
    %1 = arith.truncf %0 : vector<8x4xf32> to vector<8x4xbf16>
    %c0_1 = arith.constant 0 : index
    %c0_2 = arith.constant 0 : index
    %2 = vector.load %arg5[%c0_1, %c0_2] : memref<4x256xf32, #tpu.memory_space<vmem>>, vector<4x256xf32>
    %c0_3 = arith.constant 0 : index
    %c0_4 = arith.constant 0 : index
    %3 = vector.load %arg2[%c0_3, %c0_4] : memref<4x256xbf16, #tpu.memory_space<vmem>>, vector<4x256xbf16>
    %cst = arith.constant dense<0.000000e+00> : vector<8x256xf32>
    %4 = tpu.matmul %1, %3, %cst {dimension_numbers = #tpu.dot_dimension_numbers<[1], [0], [0], [1], [0, 0, 1, 1], [], []>} : vector<8x4xbf16>, vector<4x256xbf16>, vector<8x256xf32> -> vector<8x256xf32>
    %5 = vector.extract_strided_slice %2 {offsets = [0, 0], sizes = [1, 256], strides = [1, 1]} : vector<4x256xf32> to vector<1x256xf32>
    %6 = vector.broadcast %5 : vector<1x256xf32> to vector<8x256xf32>
    %7 = arith.addf %4, %6 : vector<8x256xf32>
    %cst_5 = arith.constant 0.000000e+00 : f32
    %8 = vector.broadcast %cst_5 : f32 to vector<8x256xf32>
    %9 = arith.maximumf %7, %8 : vector<8x256xf32>
    %10 = arith.truncf %9 : vector<8x256xf32> to vector<8x256xbf16>
    %c0_6 = arith.constant 0 : index
    %c0_7 = arith.constant 0 : index
    %c0_8 = arith.constant 0 : index
    %11 = vector.load %arg3[%c0_6, %c0_7, %c0_8] : memref<2x256x256xbf16, #tpu.memory_space<vmem>>, vector<1x256x256xbf16>
    %12 = vector.shape_cast %11 : vector<1x256x256xbf16> to vector<256x256xbf16>
    %cst_9 = arith.constant dense<0.000000e+00> : vector<8x256xf32>
    %13 = tpu.matmul %10, %12, %cst_9 {dimension_numbers = #tpu.dot_dimension_numbers<[1], [0], [0], [1], [0, 0, 1, 1], [], []>} : vector<8x256xbf16>, vector<256x256xbf16>, vector<8x256xf32> -> vector<8x256xf32>
    %14 = vector.extract_strided_slice %2 {offsets = [1, 0], sizes = [1, 256], strides = [1, 1]} : vector<4x256xf32> to vector<1x256xf32>
    %15 = vector.broadcast %14 : vector<1x256xf32> to vector<8x256xf32>
    %16 = arith.addf %13, %15 : vector<8x256xf32>
    %cst_10 = arith.constant 0.000000e+00 : f32
    %17 = vector.broadcast %cst_10 : f32 to vector<8x256xf32>
    %18 = arith.maximumf %16, %17 : vector<8x256xf32>
    %19 = arith.truncf %18 : vector<8x256xf32> to vector<8x256xbf16>
    %c1 = arith.constant 1 : index
    %c0_11 = arith.constant 0 : index
    %c0_12 = arith.constant 0 : index
    %20 = vector.load %arg3[%c1, %c0_11, %c0_12] : memref<2x256x256xbf16, #tpu.memory_space<vmem>>, vector<1x256x256xbf16>
    %21 = vector.shape_cast %20 : vector<1x256x256xbf16> to vector<256x256xbf16>
    %cst_13 = arith.constant dense<0.000000e+00> : vector<8x256xf32>
    %22 = tpu.matmul %19, %21, %cst_13 {dimension_numbers = #tpu.dot_dimension_numbers<[1], [0], [0], [1], [0, 0, 1, 1], [], []>} : vector<8x256xbf16>, vector<256x256xbf16>, vector<8x256xf32> -> vector<8x256xf32>
    %23 = vector.extract_strided_slice %2 {offsets = [2, 0], sizes = [1, 256], strides = [1, 1]} : vector<4x256xf32> to vector<1x256xf32>
    %24 = vector.broadcast %23 : vector<1x256xf32> to vector<8x256xf32>
    %25 = arith.addf %22, %24 : vector<8x256xf32>
    %cst_14 = arith.constant 0.000000e+00 : f32
    %26 = vector.broadcast %cst_14 : f32 to vector<8x256xf32>
    %27 = arith.maximumf %25, %26 : vector<8x256xf32>
    %28 = arith.truncf %27 : vector<8x256xf32> to vector<8x256xbf16>
    %c0_15 = arith.constant 0 : index
    %c0_16 = arith.constant 0 : index
    %29 = vector.load %arg4[%c0_15, %c0_16] : memref<256x2xbf16, #tpu.memory_space<vmem>>, vector<256x2xbf16>
    %cst_17 = arith.constant dense<0.000000e+00> : vector<8x2xf32>
    %30 = tpu.matmul %28, %29, %cst_17 {dimension_numbers = #tpu.dot_dimension_numbers<[1], [0], [0], [1], [0, 0, 1, 1], [], []>} : vector<8x256xbf16>, vector<256x2xbf16>, vector<8x2xf32> -> vector<8x2xf32>
    %31 = vector.extract_strided_slice %2 {offsets = [3, 0], sizes = [1, 2], strides = [1, 1]} : vector<4x256xf32> to vector<1x2xf32>
    %32 = vector.broadcast %31 : vector<1x2xf32> to vector<8x2xf32>
    %33 = arith.addf %30, %32 : vector<8x2xf32>
    %cst_18 = arith.constant 0.000000e+00 : f32
    %34 = vector.broadcast %cst_18 : f32 to vector<8x2xf32>
    %35 = arith.maximumf %33, %34 : vector<8x2xf32>
    %36 = math.absf %33 : vector<8x2xf32>
    %cst_19 = arith.constant 0.000000e+00 : f32
    %37 = vector.broadcast %cst_19 : f32 to vector<8x2xf32>
    %38 = arith.subf %37, %36 : vector<8x2xf32>
    %39 = math.exp %38 : vector<8x2xf32>
    %40 = math.log1p %39 : vector<8x2xf32>
    %41 = arith.addf %35, %40 : vector<8x2xf32>
    %42 = tpu.iota {dimensions = array<i32: 1>} : vector<8x2xi32>
    %c0_i32 = arith.constant 0 : i32
    %43 = vector.broadcast %c0_i32 : i32 to vector<8x2xi32>
    %44 = arith.cmpi eq, %42, %43 : vector<8x2xi32>
    %45 = arith.select %44, %33, %41 : vector<8x2xi1>, vector<8x2xf32>
    %c0_20 = arith.constant 0 : index
    %c0_21 = arith.constant 0 : index
    %46 = vector.load %arg6[%c0_20, %c0_21] : memref<8x2xf32, #tpu.memory_space<vmem>>, vector<8x2xf32>
    tpu.vector_store %arg6[%c0_20, %c0_21], %45 {strides = array<i32>} : memref<8x2xf32, #tpu.memory_space<vmem>>, vector<8x2xf32>,
    return
  }
  func.func @transform_0(%arg0: i32) -> (i32, i32) {
    %c0_i32 = arith.constant 0 : i32
    %c0_i32_0 = arith.constant 0 : i32
    return %arg0, %c0_i32 : i32, i32
  }
  func.func @transform_1(%arg0: i32) -> (i32, i32) {
    %c0_i32 = arith.constant 0 : i32
    %c0_i32_0 = arith.constant 0 : i32
    %c0_i32_1 = arith.constant 0 : i32
    return %c0_i32, %c0_i32_0 : i32, i32
  }
  func.func @transform_2(%arg0: i32) -> (i32, i32, i32) {
    %c0_i32 = arith.constant 0 : i32
    %c0_i32_0 = arith.constant 0 : i32
    %c0_i32_1 = arith.constant 0 : i32
    %c0_i32_2 = arith.constant 0 : i32
    return %c0_i32, %c0_i32_0, %c0_i32_1 : i32, i32, i32
  }
  func.func @transform_3(%arg0: i32) -> (i32, i32) {
    %c0_i32 = arith.constant 0 : i32
    %c0_i32_0 = arith.constant 0 : i32
    %c0_i32_1 = arith.constant 0 : i32
    return %c0_i32, %c0_i32_0 : i32, i32
  }
  func.func @transform_4(%arg0: i32) -> (i32, i32) {
    %c0_i32 = arith.constant 0 : i32
    %c0_i32_0 = arith.constant 0 : i32
    %c0_i32_1 = arith.constant 0 : i32
    return %c0_i32, %c0_i32_0 : i32, i32
  }
  func.func @transform_5(%arg0: i32) -> (i32, i32) {
    %c0_i32 = arith.constant 0 : i32
    %c0_i32_0 = arith.constant 0 : i32
    return %arg0, %c0_i32 : i32, i32
  }
}

</mosaic_0001>

<bundles_post_ra>
// kernel: neural_sde_forward.1
= control target key start
LH: loop header
LB: loop body
LE: loop exit
PB: predicated region body
PF: predicated region fallthrough
CT: control target
= control target key end

     0   :  { %vm57_vm0 = vcmask 1041408   ;;  %v1071_v1 = vmov 0   ;;  %vm53_vm1 = vcmask 31744   ;;  %vm811_vm4 = vcmask 15360   ;;  %s1374_s1 = inlined_call_operand.vmem [shape: bf16[4,256], index: 1, kind: input, shape index: {}]   ;;  %s1375_s0 = inlined_call_operand.vmem [shape: f32[8,4], index: 0, kind: input, shape index: {}]   ;;  %s1376_s2 = inlined_call_operand.vmem [shape: bf16[2,256,256], index: 2, kind: input, shape index: {}]   ;;  %s1377_s4 = inlined_call_operand.vmem [shape: f32[4,256], index: 4, kind: input, shape index: {}]   ;;  %s1378_s3 = inlined_call_operand.vmem [shape: bf16[256,2], index: 3, kind: input, shape index: {}]   ;;  %s1379_s5 = inlined_call_operand.vmem [shape: f32[8,2], index: 5, kind: output, shape index: {}]  }
   0x1   :  { %v817_v0 = vld.sshfl [vmem:[%s1374_s1] sm:$0x33 pattern:$0x76325410]  ;;  %96 = vmatprep.mubr.bf16.mxu0 %v1071_v1  ;;  %v955_v5 = vld [vmem:[%s1376_s2 + $0x4] ss:$8 sps:$4 sm:$0xff]  }
   0x2   :  { %v21_v2 = vld [vmem:[%s1375_s0] sm:$0xff]  ;;  %v52_v3 = vcombine.high %v817_v0, %v817_v0  ;;  %v59_v4 = vsel %vm57_vm0, %v817_v0, 0  ;;  %v958_v7 = vld [vmem:[%s1376_s2 + $0x14] ss:$8 sps:$4 sm:$0xff]   ;;  %319 = vmatprep.subr.bf16.mxu1 %v955_v5  ;;  %v960_v9 = vld [vmem:[%s1376_s2 + $0x10] ss:$8 sps:$4 sm:$0xff]  }
   0x3   :  { %v957_v6 = vld [vmem:[%s1376_s2] ss:$8 sps:$4 sm:$0xff]   ;;  %v22_v8 = vpack.c.bf16 %v21_v2, %v21_v2  ;;  %v961_v10 = vld [vmem:[%s1376_s2 + $0x24] ss:$8 sps:$4 sm:$0xff]   ;;  %v964_v12 = vld [vmem:[%s1376_s2 + $0x34] ss:$8 sps:$4 sm:$0xff]   ;;  %v26_v2 = vlaneseq }
   0x4   :  { %818 = vmatprep.subr.msk.bf16.mxu0 %vm57_vm0, %v52_v3  ;;  %320 = vmatpush1.bf16.msra.mxu1 %v957_v6  ;;  %v963_v11 = vld [vmem:[%s1376_s2 + $0x20] ss:$8 sps:$4 sm:$0xff]   ;;  %v966_v13 = vld [vmem:[%s1376_s2 + $0x30] ss:$8 sps:$4 sm:$0xff]   ;;  %v967_v14 = vld [vmem:[%s1376_s2 + $0x44] ss:$8 sps:$4 sm:$0xff]  }
   0x5   :  { %65 = vmatpush1.bf16.msra.mxu0 %v59_v4  ;;  %321 = vmatprep.subr.bf16.mxu1 %v958_v7  ;;  %v969_v15 = vld [vmem:[%s1376_s2 + $0x40] ss:$8 sps:$4 sm:$0xff]   ;;  %v970_v16 = vld [vmem:[%s1376_s2 + $0x54] ss:$8 sps:$4 sm:$0xff]   ;;  %v972_v17 = vld [vmem:[%s1376_s2 + $0x50] ss:$8 sps:$4 sm:$0xff]  }
   0x6   :  { %v973_v18 = vld [vmem:[%s1376_s2 + $0x64] ss:$8 sps:$4 sm:$0xff]   ;;  %v975_v19 = vld [vmem:[%s1376_s2 + $0x60] ss:$8 sps:$4 sm:$0xff]   ;;  %v976_v20 = vld [vmem:[%s1376_s2 + $0x74] ss:$8 sps:$4 sm:$0xff]  }
   0x7   :  { %v978_v21 = vld [vmem:[%s1376_s2 + $0x70] ss:$8 sps:$4 sm:$0xff]   ;;  %v979_v22 = vld [vmem:[%s1376_s2 + $0x84] ss:$8 sps:$4 sm:$0xff]   ;;  %v981_v23 = vld [vmem:[%s1376_s2 + $0x80] ss:$8 sps:$4 sm:$0xff]  }
   0x8   :  { %819 = vmatmul.mubr.msk.bf16.vlgmr.msra.gmra.mrb[0].mxu0 %vm53_vm1, %v22_v8  ;;  %322 = vmatpush1.bf16.msra.mxu1 %v960_v9  ;;  %v982_v24 = vld [vmem:[%s1376_s2 + $0x94] ss:$8 sps:$4 sm:$0xff]   ;;  %v984_v25 = vld [vmem:[%s1376_s2 + $0x90] ss:$8 sps:$4 sm:$0xff]   ;;  %v985_v26 = vld [vmem:[%s1376_s2 + $0xa4] ss:$8 sps:$4 sm:$0xff]  }
   0x9   :  { %323 = vmatprep.subr.bf16.mxu1 %v961_v10  ;;  %v987_v27 = vld [vmem:[%s1376_s2 + $0xa0] ss:$8 sps:$4 sm:$0xff]   ;;  %v988_v28 = vld [vmem:[%s1376_s2 + $0xb4] ss:$8 sps:$4 sm:$0xff]   ;;  %v990_v29 = vld [vmem:[%s1376_s2 + $0xb0] ss:$8 sps:$4 sm:$0xff]  }
   0xa   :  { %v991_v30 = vld [vmem:[%s1376_s2 + $0xc4] ss:$8 sps:$4 sm:$0xff]   ;;  %v993_v31 = vld [vmem:[%s1376_s2 + $0xc0] ss:$8 sps:$4 sm:$0xff]   ;;  %v994_v32 = vld [vmem:[%s1376_s2 + $0xd4] ss:$8 sps:$4 sm:$0xff]  }
   0xb   :  { %v996_v33 = vld [vmem:[%s1376_s2 + $0xd0] ss:$8 sps:$4 sm:$0xff]   ;;  %v997_v34 = vld [vmem:[%s1376_s2 + $0xe4] ss:$8 sps:$4 sm:$0xff]   ;;  %v999_v35 = vld [vmem:[%s1376_s2 + $0xe0] ss:$8 sps:$4 sm:$0xff]  }
   0xc   :  { %324 = vmatpush1.bf16.msra.mxu1 %v963_v11  ;;  %v1000_v36 = vld [vmem:[%s1376_s2 + $0xf4] ss:$8 sps:$4 sm:$0xff]   ;;  %v1002_v37 = vld [vmem:[%s1376_s2 + $0xf0] ss:$8 sps:$4 sm:$0xff]   ;;  %v1003_v38 = vld [vmem:[%s1376_s2 + $0x100] ss:$8 sps:$4 sm:$0xff]  }
   0xd   :  { %325 = vmatprep.subr.bf16.mxu1 %v964_v12  ;;  %v1005_v39 = vld [vmem:[%s1376_s2 + $0x104] ss:$8 sps:$4 sm:$0xff]   ;;  %v1008_v40 = vld [vmem:[%s1376_s2 + $0x114] ss:$8 sps:$4 sm:$0xff]   ;;  %v1006_v41 = vld [vmem:[%s1376_s2 + $0x110] ss:$8 sps:$4 sm:$0xff]  }
   0xe   :  { %575 = vmatprep.subr.bf16.mxu0 %v1005_v39  ;;  %v1011_v42 = vld [vmem:[%s1376_s2 + $0x124] ss:$8 sps:$4 sm:$0xff]   ;;  %v1009_v43 = vld [vmem:[%s1376_s2 + $0x120] ss:$8 sps:$4 sm:$0xff]   ;;  %v1014_v44 = vld [vmem:[%s1376_s2 + $0x134] ss:$8 sps:$4 sm:$0xff]  }
   0xf   :  { %576 = vmatpush1.bf16.msra.mxu0 %v1003_v38  ;;  %v1012_v45 = vld [vmem:[%s1376_s2 + $0x130] ss:$8 sps:$4 sm:$0xff]   ;;  %v1017_v46 = vld [vmem:[%s1376_s2 + $0x144] ss:$8 sps:$4 sm:$0xff]   ;;  %v1015_v47 = vld [vmem:[%s1376_s2 + $0x140] ss:$8 sps:$4 sm:$0xff]  }
  0x10   :  { %326 = vmatpush1.bf16.msra.mxu1 %v966_v13  ;;  %577 = vmatprep.subr.bf16.mxu0 %v1008_v40  ;;  %v1020_v48 = vld [vmem:[%s1376_s2 + $0x154] ss:$8 sps:$4 sm:$0xff]   ;;  %v1018_v49 = vld [vmem:[%s1376_s2 + $0x150] ss:$8 sps:$4 sm:$0xff]   ;;  %v1023_v50 = vld [vmem:[%s1376_s2 + $0x164] ss:$8 sps:$4 sm:$0xff]  }
  0x11   :  { %327 = vmatprep.subr.bf16.mxu1 %v967_v14  ;;  %v1021_v51 = vld [vmem:[%s1376_s2 + $0x160] ss:$8 sps:$4 sm:$0xff]   ;;  %v1026_v52 = vld [vmem:[%s1376_s2 + $0x174] ss:$8 sps:$4 sm:$0xff]   ;;  %v1024_v53 = vld [vmem:[%s1376_s2 + $0x170] ss:$8 sps:$4 sm:$0xff]  }
  0x12   :  { %v1029_v54 = vld [vmem:[%s1376_s2 + $0x184] ss:$8 sps:$4 sm:$0xff]   ;;  %v1027_v55 = vld [vmem:[%s1376_s2 + $0x180] ss:$8 sps:$4 sm:$0xff]   ;;  %v1032_v56 = vld [vmem:[%s1376_s2 + $0x194] ss:$8 sps:$4 sm:$0xff]  }
  0x13   :  { %578 = vmatpush1.bf16.msra.mxu0 %v1006_v41  ;;  %v1030_v57 = vld [vmem:[%s1376_s2 + $0x190] ss:$8 sps:$4 sm:$0xff]   ;;  %v1035_v58 = vld [vmem:[%s1376_s2 + $0x1a4] ss:$8 sps:$4 sm:$0xff]   ;;  %v1033_v59 = vld [vmem:[%s1376_s2 + $0x1a0] ss:$8 sps:$4 sm:$0xff]  }
  0x14   :  { %328 = vmatpush1.bf16.msra.mxu1 %v969_v15  ;;  %579 = vmatprep.subr.bf16.mxu0 %v1011_v42  ;;  %v1038_v60 = vld [vmem:[%s1376_s2 + $0x1b4] ss:$8 sps:$4 sm:$0xff]   ;;  %v1036_v61 = vld [vmem:[%s1376_s2 + $0x1b0] ss:$8 sps:$4 sm:$0xff]   ;;  %v1041_v62 = vld [vmem:[%s1376_s2 + $0x1c4] ss:$8 sps:$4 sm:$0xff]  }
  0x15   :  { %329 = vmatprep.subr.bf16.mxu1 %v970_v16  ;;  %v1039_v63 = vld [vmem:[%s1376_s2 + $0x1c0] ss:$8 sps:$4 sm:$0xff]   ;;  %v1044_v0 = vld [vmem:[%s1376_s2 + $0x1d4] ss:$8 sps:$4 sm:$0xff]   ;;  %v1042_v1 = vld [vmem:[%s1376_s2 + $0x1d0] ss:$8 sps:$4 sm:$0xff]  }
  0x16   :  { %v1289_v3 = vshrl.u32 %v26_v2, 7  ;;  %v1295_v5 = vld [vmem:[%s1377_s4] sm:$0xff] }
  0x17   :  { %580 = vmatpush1.bf16.msra.mxu0 %v1009_v43 }
  0x18   :  { %330 = vmatpush1.bf16.msra.mxu1 %v972_v17  ;;  %581 = vmatprep.subr.bf16.mxu0 %v1014_v44  ;;  %v28_v4 = vsub.s32 0, %v1289_v3  ;;  %v32_v6 = vsub.s32 4, %v1289_v3  ;;  %v147_v38 = vsub.s32 5, %v1289_v3 }
  0x19   :  { %331 = vmatprep.subr.bf16.mxu1 %v973_v18 }
  0x1a   :  { %v29_v7 = vrot.slane %v1295_v5, %v28_v4  ;;  %v33_v8 = vrot.slane %v1295_v5, %v32_v6  ;;  %v148_v40 = vrot.slane %v1295_v5, %v147_v38 }
  0x1b   :  { %582 = vmatpush1.bf16.msra.mxu0 %v1012_v45 }
  0x1c   :  { %332 = vmatpush1.bf16.msra.mxu1 %v975_v19  ;;  %583 = vmatprep.subr.bf16.mxu0 %v1017_v46  ;;  %v39_v9 = vrot.slane %v29_v7, %v28_v4  ;;  %v43_v10 = vrot.slane %v33_v8, %v28_v4 }
  0x1d   :  { %333 = vmatprep.subr.bf16.mxu1 %v976_v20 }
  0x1f   :  { %584 = vmatpush1.bf16.msra.mxu0 %v1015_v47 }
  0x20   :  { %334 = vmatpush1.bf16.msra.mxu1 %v978_v21  ;;  %585 = vmatprep.subr.bf16.mxu0 %v1020_v48  ;;  %v1047_v21 = vld [vmem:[%s1376_s2 + $0x1e4] ss:$8 sps:$4 sm:$0xff]  }
  0x21   :  { %335 = vmatprep.subr.bf16.mxu1 %v979_v22  ;;  %v1045_v22 = vld [vmem:[%s1376_s2 + $0x1e0] ss:$8 sps:$4 sm:$0xff]  }
  0x23   :  { %586 = vmatpush1.bf16.msra.mxu0 %v1018_v49 }
  0x24   :  { %336 = vmatpush1.bf16.msra.mxu1 %v981_v23  ;;  %587 = vmatprep.subr.bf16.mxu0 %v1023_v50  ;;  %v1050_v23 = vld [vmem:[%s1376_s2 + $0x1f4] ss:$8 sps:$4 sm:$0xff]  }
  0x25   :  { %337 = vmatprep.subr.bf16.mxu1 %v982_v24  ;;  %v1048_v24 = vld [vmem:[%s1376_s2 + $0x1f0] ss:$8 sps:$4 sm:$0xff]  }
  0x27   :  { %588 = vmatpush1.bf16.msra.mxu0 %v1021_v51 }
  0x28   :  { %338 = vmatpush1.bf16.msra.mxu1 %v984_v25  ;;  %589 = vmatprep.subr.bf16.mxu0 %v1026_v52  ;;  %v1051_v25 = vld [vmem:[%s1378_s3 + $0x40] sm:$0xff]  }
  0x29   :  { %339 = vmatprep.subr.bf16.mxu1 %v985_v26  ;;  %v1052_v26 = vld [vmem:[%s1378_s3] sm:$0xff]  }
  0x2b   :  { %590 = vmatpush1.bf16.msra.mxu0 %v1024_v53  ;;  %v1063_v53 = vld [vmem:[%s1378_s3 + $0x70] sm:$0xff]  }
  0x2c   :  { %340 = vmatpush1.bf16.msra.mxu1 %v987_v27  ;;  %591 = vmatprep.subr.bf16.mxu0 %v1029_v54  ;;  %v1053_v27 = vld [vmem:[%s1378_s3 + $0x48] sm:$0xff]   ;;  %v1064_v54 = vld [vmem:[%s1378_s3 + $0x30] sm:$0xff]  }
  0x2d   :  { %341 = vmatprep.subr.bf16.mxu1 %v988_v28  ;;  %v1054_v28 = vld [vmem:[%s1378_s3 + $0x8] sm:$0xff]  }
  0x2f   :  { %592 = vmatpush1.bf16.msra.mxu0 %v1027_v55  ;;  %v1065_v55 = vld [vmem:[%s1378_s3 + $0x78] sm:$0xff]  }
  0x30   :  { %342 = vmatpush1.bf16.msra.mxu1 %v990_v29  ;;  %593 = vmatprep.subr.bf16.mxu0 %v1032_v56  ;;  %v1055_v29 = vld [vmem:[%s1378_s3 + $0x50] sm:$0xff]   ;;  %v1066_v56 = vld [vmem:[%s1378_s3 + $0x38] sm:$0xff]  }
  0x31   :  { %343 = vmatprep.subr.bf16.mxu1 %v991_v30  ;;  %v1056_v30 = vld [vmem:[%s1378_s3 + $0x10] sm:$0xff]  }
  0x33   :  { %594 = vmatpush1.bf16.msra.mxu0 %v1030_v57  ;;  %v399_v57 = vsub.s32 2, %v1289_v3 }
  0x34   :  { %344 = vmatpush1.bf16.msra.mxu1 %v993_v31  ;;  %595 = vmatprep.subr.bf16.mxu0 %v1035_v58  ;;  %v1057_v31 = vld [vmem:[%s1378_s3 + $0x58] sm:$0xff]   ;;  %v403_v58 = vsub.s32 6, %v1289_v3 }
  0x35   :  { %345 = vmatprep.subr.bf16.mxu1 %v994_v32  ;;  %v1058_v32 = vld [vmem:[%s1378_s3 + $0x18] sm:$0xff]  }
  0x37   :  { %596 = vmatpush1.bf16.msra.mxu0 %v1033_v59  ;;  %v400_v59 = vrot.slane %v1295_v5, %v399_v57 }
  0x38   :  { %346 = vmatpush1.bf16.msra.mxu1 %v996_v33  ;;  %597 = vmatprep.subr.bf16.mxu0 %v1038_v60  ;;  %v1059_v33 = vld [vmem:[%s1378_s3 + $0x60] sm:$0xff]   ;;  %v404_v60 = vrot.slane %v1295_v5, %v403_v58 }
  0x39   :  { %347 = vmatprep.subr.bf16.mxu1 %v997_v34  ;;  %v1060_v34 = vld [vmem:[%s1378_s3 + $0x20] sm:$0xff]  }
  0x3b   :  { %598 = vmatpush1.bf16.msra.mxu0 %v1036_v61  ;;  %v410_v61 = vrot.slane %v400_v59, %v399_v57 }
  0x3c   :  { %348 = vmatpush1.bf16.msra.mxu1 %v999_v35  ;;  %599 = vmatprep.subr.bf16.mxu0 %v1041_v62  ;;  %v1061_v35 = vld [vmem:[%s1378_s3 + $0x68] sm:$0xff]   ;;  %v414_v62 = vrot.slane %v404_v60, %v399_v57 }
  0x3d   :  { %349 = vmatprep.subr.bf16.mxu1 %v1000_v36  ;;  %v1062_v36 = vld [vmem:[%s1378_s3 + $0x28] sm:$0xff]  }
  0x3f   :  { %600 = vmatpush1.bf16.msra.mxu0 %v1039_v63 }
  0x40   :  { %350 = vmatpush1.bf16.msra.mxu1 %v1002_v37  ;;  %601 = vmatprep.subr.bf16.mxu0 %v1044_v0  ;;  %v143_v37 = vsub.s32 1, %v1289_v3 }
  0x41   :  { %932 = vmatprep.subr.bf16.mxu1 %v1051_v25 }
  0x42   :  { %v144_v39 = vrot.slane %v1295_v5, %v143_v37  ;;  %v158_v42 = vrot.slane %v148_v40, %v143_v37 }
  0x43   :  { %602 = vmatpush1.bf16.msra.mxu0 %v1042_v1 }
  0x44   :  { %603 = vmatprep.subr.bf16.mxu0 %v1047_v21  ;;  %v154_v41 = vrot.slane %v144_v39, %v143_v37 }
  0x47   :  { %604 = vmatpush1.bf16.msra.mxu0 %v1045_v22 }
  0x48   :  { %605 = vmatprep.subr.bf16.mxu0 %v1050_v23 }
  0x4b   :  { %606 = vmatpush1.bf16.msra.mxu0 %v1048_v24 }
  0xdb   :  { %v98_v11 = vpop.f32.mrb[0].mxu0 }
  0xdc   :  { %v99_v12 = vadd.f32 %v98_v11, %v39_v9  ;;  %v100_v13 = vpop.f32.mrb[1].mxu0 }
  0xdd   :  { %v101_v14 = vadd.f32 %v100_v13, %v43_v10  ;;  %v102_v15 = vpop.f32.mrb[2].mxu0 }
  0xde   :  { %v105_v16 = vmax.f32 %v99_v12, 0.0  ;;  %v103_v17 = vpop.f32.mrb[3].mxu0  ;;  %v654_v12 = vsub.s32 3, %v1289_v3  ;;  %v808_v3 = vand.u32 127, %v26_v2 }
  0xdf   :  { %v106_v18 = vmax.f32 %v101_v14, 0.0 }
  0xe0   :  { %v107_v20 = vpack.c.bf16 %v105_v16, %v105_v16  ;;  %v655_v14 = vrot.slane %v1295_v5, %v654_v12  ;;  %vm809_vm3 = vcmp.eq.s32.totalorder %v808_v3, 0 }
  0xe1   :  { %v108_v19 = vpack.c.bf16 %v106_v18, %v106_v18 }
  0xe3   :  { %351 = vmatprep.mubr.bf16.mxu1 %v108_v19 }
  0xe4   :  { %352 = vmatmul.mubr.bf16.vlgmr.msra.gmra.mrb[0].mxu1 %v107_v20 }
  0xe5   :  { %933 = vmatpush3.bf16.msra.mxu1 %v1052_v26 }
  0xe6   :  { %934 = vmatprep.subr.bf16.mxu1 %v1053_v27 }
  0xe9   :  { %935 = vmatpush3.bf16.msra.mxu1 %v1054_v28 }
  0xea   :  { %936 = vmatprep.subr.bf16.mxu1 %v1055_v29 }
  0xed   :  { %937 = vmatpush3.bf16.msra.mxu1 %v1056_v30 }
  0xee   :  { %938 = vmatprep.subr.bf16.mxu1 %v1057_v31 }
  0xf1   :  { %939 = vmatpush3.bf16.msra.mxu1 %v1058_v32 }
  0xf2   :  { %940 = vmatprep.subr.bf16.mxu1 %v1059_v33 }
  0xf5   :  { %941 = vmatpush3.bf16.msra.mxu1 %v1060_v34 }
  0xf6   :  { %942 = vmatprep.subr.bf16.mxu1 %v1061_v35 }
  0xf9   :  { %943 = vmatpush3.bf16.msra.mxu1 %v1062_v36 }
  0xfa   :  { %944 = vmatprep.subr.bf16.mxu1 %v1063_v53 }
  0xfd   :  { %945 = vmatpush3.bf16.msra.mxu1 %v1064_v54 }
  0xfe   :  { %946 = vmatprep.subr.bf16.mxu1 %v1065_v55 }
 0x101   :  { %947 = vmatpush3.bf16.msra.mxu1 %v1066_v56 }
 0x1b7   :  { %v353_v43 = vpop.f32.mrb[0].mxu1 }
 0x1b8   :  { %v354_v44 = vadd.f32 %v353_v43, %v154_v41  ;;  %v355_v45 = vpop.f32.mrb[1].mxu1 }
 0x1b9   :  { %v356_v46 = vadd.f32 %v355_v45, %v158_v42  ;;  %v357_v47 = vpop.f32.mrb[2].mxu1 }
 0x1ba   :  { %v360_v48 = vmax.f32 %v354_v44, 0.0  ;;  %v358_v49 = vpop.f32.mrb[3].mxu1 }
 0x1bb   :  { %v361_v50 = vmax.f32 %v356_v46, 0.0 }
 0x1bc   :  { %v362_v52 = vpack.c.bf16 %v360_v48, %v360_v48 }
 0x1bd   :  { %v363_v51 = vpack.c.bf16 %v361_v50, %v361_v50 }
 0x1bf   :  { %607 = vmatprep.mubr.bf16.mxu0 %v363_v51 }
 0x1c0   :  { %608 = vmatmul.mubr.bf16.vlgmr.msra.gmra.mrb[4].mxu0 %v362_v52 }
 0x293   :  { %v609_v63 = vpop.f32.mrb[4].mxu0 }
 0x294   :  { %v610_v0 = vadd.f32 %v609_v63, %v410_v61  ;;  %v611_v1 = vpop.f32.mrb[5].mxu0 }
 0x295   :  { %v612_v4 = vadd.f32 %v611_v1, %v414_v62  ;;  %v613_v6 = vpop.f32.mrb[6].mxu0 }
 0x296   :  { %v616_v7 = vmax.f32 %v610_v0, 0.0  ;;  %v614_v8 = vpop.f32.mrb[7].mxu0 }
 0x297   :  { %v617_v9 = vmax.f32 %v612_v4, 0.0 }
 0x298   :  { %v618_v11 = vpack.c.bf16 %v616_v7, %v616_v7 }
 0x299   :  { %v619_v10 = vpack.c.bf16 %v617_v9, %v617_v9 }
 0x29b   :  { %784 = vmatprep.mubr.bf16.mxu1 %v619_v10 }
 0x29c   :  { %785 = vmatmul.mubr.bf16.vlgmr.msra.gmra.mrb[4].mxu1 %v618_v11 }
 0x36f   :  { %v948_v13 = vpop.f32.mrb[4].mxu1 }
 0x370   :  { %v949_v15 = vpop.f32.mrb[5].mxu1 }
 0x371   :  { %v950_v16 = vadd.f32 %v949_v15, %v948_v13  ;;  %v951_v17 = vpop.f32.mrb[6].mxu1 }
 0x372   :  { %v952_v18 = vpop.f32.mrb[7].mxu1 }
 0x373   :  { %v787_v19 = vadd.f32 %v950_v16, %v655_v14 }
 0x375   :  { %v793_v20 = vand.u32 2147483647, %v787_v19  ;;  %v792_v30 = vmax.f32 %v787_v19, 0.0 }
 0x377   :  { %v794_v21 = vsub.f32 0.0, %v793_v20 }
 0x379   :  { %v795_v22 = vmul.f32 1.442695, %v794_v21 }
 0x37b   :  { %1067 = vpow2.f32 %v795_v22 }
 0x385   :  { %v1068_v23 = vpop.eup %1067 }
 0x386   :  { %v797_v24 = vadd.f32 1.0, %v1068_v23  ;;  %v800_v25 = vmul.f32 -0.5, %v1068_v23  ;;  %v803_v27 = vand.u32 2147483647, %v1068_v23 }
 0x388   :  { %1069 = vlog2.f32 %v797_v24  ;;  %v801_v26 = vadd.f32 1.0, %v800_v25  ;;  %vm804_vm2 = vcmp.lt.f32.partialorder %v803_v27, 0.0004427343 }
 0x38a   :  { %v802_v5 = vmul.f32 %v1068_v23, %v801_v26 }
 0x392   :  { %v1070_v28 = vpop.eup %1069 }
 0x393   :  { %v799_v29 = vmul.f32 0.6931472, %v1070_v28 }
 0x395   :  { %v805_v31 = vsel %vm804_vm2, %v802_v5, %v799_v29 }
 0x396   :  { %v806_v32 = vadd.f32 %v805_v31, %v792_v30 }
 0x398   :  { %v810_v33 = vsel %vm809_vm3, %v787_v19, %v806_v32 }
 0x399   :  { %812 = vst.msk [vmem:[%s1379_s5] sm:$0xff] %vm811_vm4, %v810_v33 }

</bundles_post_ra>
